<compile_context>
chip_gen: v7x
topology: tpu7x:2x2x1
jax: 0.10.0
libtpu: 0.0.40
codegen_flags: <defaults>
</compile_context>

<pallas_src>
import functools

import numpy as np

import jax
import jax.numpy as jnp
from jax.experimental import pallas as pl
from jax.experimental.pallas import tpu as pltpu

# ConvTranspose2d(k=4, s=2, p=1): output phase a in {0,1} is fed by kernel taps (ky, input offset).
_TAPS = {0: ((1, 0), (3, -1)), 1: ((0, 1), (2, 0))}
# Spatial shift k = (dy+1)*3 + (dx+1)
_SHIFTS = tuple((dy, dx) for dy in (-1, 0, 1) for dx in (-1, 0, 1))


# --------------------------- pltpu.roll direction probe ------------------------------
# pltpu.roll is documented to match jnp.roll (out[i] = x[i - shift]); probe once OUTSIDE jit so a
# direction flip in any runtime can never silently corrupt the conv taps.
_ROLL_DIR = None  # +1: jnp.roll convention, -1: opposite


def _roll_probe_kernel(x_ref, o_ref):
    o_ref[...] = pltpu.roll(x_ref[...], shift=1, axis=0)


def resolve_roll_direction():
    global _ROLL_DIR
    if _ROLL_DIR is None:
        x = jnp.arange(8 * 128, dtype=jnp.float32).reshape(8, 128)
        got = pl.pallas_call(
            _roll_probe_kernel,
            out_shape=jax.ShapeDtypeStruct((8, 128), jnp.float32))(x)
        _ROLL_DIR = 1 if bool(jnp.array_equal(got, jnp.roll(x, 1, 0))) else -1
    return _ROLL_DIR


# ----------------------------------- fused kernel ------------------------------------

def _decoder_kernel(x_ref, m_ref,
                    w1a_ref, sh1a_ref, w2a_ref, sh2a_ref,      # ResBlock 1
                    w1b_ref, sh1b_ref, w2b_ref, sh2b_ref,      # ResBlock 2
                    wt1_ref, sh3_ref,                           # ConvT1 (phase packed, BN3 folded)
                    wt2_ref, b2_ref,                            # ConvT2 (phase composed)
                    o_ref, *, H, W, roll_dir):
    """One batch image per grid step.  x: (R, zdim) f32, rows flattened row-major (y*W + x)."""
    f32 = jnp.float32
    R = H * W
    masks = [m_ref[k] for k in range(9)]                        # (R, 1) f32 boundary masks

    def shift_slab(act):
        # act: (R, C) f32.  Returns (R, 9C) bf16: the 9 zero-padded spatial shifts of act
        # concatenated along channels.  Rolls hit the XLU, masks the VPU - both idle under MXU.
        pieces = []
        for k, (dy, dx) in enumerate(_SHIFTS):
            d = dy * W + dx
            if d == 0:
                pieces.append(act)
            else:
                rolled = pltpu.roll(act, shift=(-roll_dir * d) % R, axis=0)
                pieces.append(rolled * masks[k])
        return jnp.concatenate(pieces, axis=-1).astype(jnp.bfloat16)

    def tap_conv(act, w_ref, sh_ref):
        # 3x3 conv / phase-packed ConvTranspose as ONE (R, 9C) @ (9C, Cout) MXU pass, f32 accum.
        return jnp.dot(shift_slab(act), w_ref[...],
                       preferred_element_type=f32) + sh_ref[...]

    def resblock(act, w1_ref, sh1_ref, w2_ref, sh2_ref):
        h = jnp.maximum(tap_conv(jnp.maximum(act, 0.0), w1_ref, sh1_ref), 0.0)
        c2 = jnp.dot(h.astype(jnp.bfloat16), w2_ref[...],
                     preferred_element_type=f32) + sh2_ref[...]
        return act + c2                                          # residual trunk stays f32

    a = x_ref[...].astype(f32)
    a = resblock(a, w1a_ref, sh1a_ref, w2a_ref, sh2a_ref)
    a = resblock(a, w1b_ref, sh1b_ref, w2b_ref, sh2b_ref)
    # decoder ReLU -> ConvT1 (+BN3) -> ReLU.  u[r, (a,b,h)] = hi-res activation at (2y+a, 2x+b, h).
    u = jnp.maximum(tap_conv(jnp.maximum(a, 0.0), wt1_ref, sh3_ref), 0.0)
    # ConvT2 composed with ConvT1's phase packing: stays on the lo-res grid, same shifts/masks.
    # Output cols (ra, rb, c): final pixel (4y+ra, 4x+rb).  64-lane store (was 16 in rev 2).
    # TODO(synk): a fully lane-dense (>=128) store needs an in-kernel x->lane relayout.
    o_ref[...] = jnp.tanh(tap_conv(u, wt2_ref, b2_ref)).astype(o_ref.dtype)


def _full(arr):
    return pl.BlockSpec(arr.shape, lambda n, nd=arr.ndim: (0,) * nd)


def decoder_fused(x2d, masks, weights, *, n_batch, H, W, out_cols, roll_dir):
    R = H * W
    C = x2d.shape[1]
    kernel = functools.partial(_decoder_kernel, H=H, W=W, roll_dir=roll_dir)
    return pl.pallas_call(
        kernel,
        out_shape=jax.ShapeDtypeStruct((n_batch * R, out_cols), jnp.float32),
        grid=(n_batch,),
        in_specs=[pl.BlockSpec((R, C), lambda n: (n, 0)), _full(masks)]
                 + [_full(w) for w in weights],
        out_specs=pl.BlockSpec((R, out_cols), lambda n: (n, 0)),
        compiler_params=pltpu.CompilerParams(dimension_semantics=("parallel",)),
    )(x2d, masks, *weights)


# ----------------------------------- trace-time prep ---------------------------------

def _boundary_masks(H, W):
    """mask[k, r, 0] = 1 iff (y+dy, x+dx) is inside the image, k = (dy+1)*3+(dx+1)."""
    R = H * W
    y, x = np.divmod(np.arange(R), W)
    m = np.zeros((9, R, 1), np.float32)
    for dy, dx in _SHIFTS:
        k = (dy + 1) * 3 + (dx + 1)
        ok = (y + dy >= 0) & (y + dy < H) & (x + dx >= 0) & (x + dx < W)
        m[k, :, 0] = ok.astype(np.float32)
    return jnp.asarray(m)


def _bn_fold(bias, gamma, beta, mean, var, eps=1e-5):
    scale = gamma / jnp.sqrt(var + eps)
    shift = (beta - mean * scale + bias * scale).reshape(1, -1).astype(jnp.float32)
    return scale, shift


def _prep_resblock(p):
    c = p["conv1_b"].shape[0]
    sc1, sh1 = _bn_fold(p["conv1_b"], p["bn1_g"], p["bn1_b"], p["bn1_m"], p["bn1_v"])
    # Conv2d weight (Cout, Cin, 3, 3) -> rows (k=ky*3+kx, Cin), BN1 scale folded into columns.
    w1 = jnp.transpose(p["conv1_w"], (2, 3, 1, 0)).reshape(9 * c, c)
    w1 = (w1 * sc1[None, :]).astype(jnp.bfloat16)
    sc2, sh2 = _bn_fold(p["conv2_b"], p["bn2_g"], p["bn2_b"], p["bn2_m"], p["bn2_v"])
    w2 = (p["conv2_w"][:, :, 0, 0].T * sc2[None, :]).astype(jnp.bfloat16)
    return w1, sh1, w2, sh2


def _pack_convt1(w, scale):
    """(Cin, Cout, 4, 4) -> (9*Cin, 4*Cout): rows (shift k, cin), cols (phase a*2+b, cout)."""
    cin, cout = w.shape[0], w.shape[1]
    p1 = np.zeros((9, 4, 4, 4), np.float32)
    for a in (0, 1):
        for ky, dy in _TAPS[a]:
            for b in (0, 1):
                for kx, dx in _TAPS[b]:
                    p1[(dy + 1) * 3 + (dx + 1), ky, kx, a * 2 + b] = 1.0
    ws = w * scale[None, :, None, None]
    wp = jnp.einsum("ioyx,kyxp->kipo", ws, jnp.asarray(p1))
    return wp.reshape(9 * cin, 4 * cout).astype(jnp.bfloat16)


def _pack_convt2_composed(w):
    """ConvT2 (Cin=hidden, Cout=n_chan, 4, 4) composed with ConvT1's output phases.
    Rows: (lo-res shift k, input phase a'*2+b', h).  Cols: (ra*4+rb, c) with (ra, rb) = (2a+A, 2b+B)
    the final pixel offset inside the 4x4 block of low-res position (y, x)."""
    cin, cout = w.shape[0], w.shape[1]
    p2 = np.zeros((9, 4, 4, 4, 16), np.float32)
    for a in (0, 1):
        for A in (0, 1):
            for ky, dY in _TAPS[A]:
                ap, dyp = (a + dY) % 2, (a + dY) // 2
                for b in (0, 1):
                    for B in (0, 1):
                        for kx, dX in _TAPS[B]:
                            bp, dxp = (b + dX) % 2, (b + dX) // 2
                            k = (dyp + 1) * 3 + (dxp + 1)
                            r = (2 * a + A) * 4 + (2 * b + B)
                            p2[k, ap * 2 + bp, ky, kx, r] += 1.0
    wp = jnp.einsum("hcyx,kqyxr->kqhrc", w, jnp.asarray(p2))
    return wp.reshape(9 * 4 * cin, 16 * cout).astype(jnp.bfloat16)


# ------------------------------------- forward ---------------------------------------

def oord_decoder_forward(x_nchw, params, *, roll_dir=1):
    """NCHW in / NCHW out (PyTorch convention).  Eval-mode BatchNorm (running stats)."""
    N, zdim, H, W = x_nchw.shape
    hidden = params["convt1_w"].shape[1]
    n_chan = params["convt2_w"].shape[1]

    x2d = jnp.transpose(x_nchw, (0, 2, 3, 1)).reshape(N * H * W, zdim).astype(jnp.float32)

    masks = _boundary_masks(H, W)
    rb1 = _prep_resblock(params["res1"])
    rb2 = _prep_resblock(params["res2"])
    sc3, sh3 = _bn_fold(params["convt1_b"], params["bn3_g"], params["bn3_b"],
                        params["bn3_m"], params["bn3_v"])
    wt1 = _pack_convt1(params["convt1_w"], sc3)                        # (9*zdim, 4*hidden)
    sh3p = jnp.tile(sh3, (1, 4))                                       # (1, 4*hidden)
    wt2 = _pack_convt2_composed(params["convt2_w"])                    # (36*hidden, 16*n_chan)
    b2p = jnp.tile(params["convt2_b"].reshape(1, -1).astype(jnp.float32), (1, 16))

    weights = (*rb1, *rb2, wt1, sh3p, wt2, b2p)
    y = decoder_fused(x2d, masks, weights, n_batch=N, H=H, W=W,
                      out_cols=16 * n_chan, roll_dir=roll_dir)         # (N*H*W, 16*n_chan)

    # rows (n, y, x); cols (ra, rb, c); final pixel (4y+ra, 4x+rb).
    y = y.reshape(N, H, W, 4, 4, n_chan).transpose(0, 1, 3, 2, 4, 5)
    y = y.reshape(N, 4 * H, 4 * W, n_chan)
    return jnp.transpose(y, (0, 3, 1, 2))


# ------------------------------ deterministic parameters -----------------------------

def init_params(key, n_chan, zdim, hidden):
    keys = iter(jax.random.split(key, 40))

    def nrm(shape, s=0.1):
        return jax.random.normal(next(keys), shape, jnp.float32) * s

    def uni(shape, lo, hi):
        return jax.random.uniform(next(keys), shape, jnp.float32, lo, hi)

    def resblock_params(dim):
        return dict(
            conv1_w=nrm((dim, dim, 3, 3)), conv1_b=nrm((dim,)),
            bn1_g=uni((dim,), 0.5, 1.5), bn1_b=nrm((dim,)),
            bn1_m=nrm((dim,)), bn1_v=uni((dim,), 0.5, 1.5),
            conv2_w=nrm((dim, dim, 1, 1)), conv2_b=nrm((dim,)),
            bn2_g=uni((dim,), 0.5, 1.5), bn2_b=nrm((dim,)),
            bn2_m=nrm((dim,)), bn2_v=uni((dim,), 0.5, 1.5),
        )

    return dict(
        res1=resblock_params(zdim),
        res2=resblock_params(zdim),
        convt1_w=nrm((zdim, hidden, 4, 4)), convt1_b=nrm((hidden,)),
        bn3_g=uni((hidden,), 0.5, 1.5), bn3_b=nrm((hidden,)),
        bn3_m=nrm((hidden,)), bn3_v=uni((hidden,), 0.5, 1.5),
        convt2_w=nrm((hidden, n_chan, 4, 4)), convt2_b=nrm((n_chan,)),
    )


if __name__ == "__main__":
    key = jax.random.PRNGKey(0)
    kx, kp = jax.random.split(key)
    N, n_chan, zdim, hidden, H = 2, 4, 16, 32, 8
    x = jax.random.normal(kx, (N, zdim, H, H), jnp.float32)    # NCHW like the PyTorch module
    params = init_params(kp, n_chan, zdim, hidden)

    roll_dir = resolve_roll_direction()                        # resolved outside jit
    fwd = jax.jit(functools.partial(oord_decoder_forward, roll_dir=roll_dir))
    out = fwd(x, params)
    jax.block_until_ready(out)
    assert out.shape == (N, n_chan, 4 * H, 4 * H), out.shape
    print("KERNEL_OK")
</pallas_src>

<mosaic_0001>
module attributes {stable_mosaic.version = 11 : i64} {
  func.func @_roll_probe_kernel(%arg0: memref<8x128xf32, #tpu.memory_space<vmem>>, %arg1: memref<8x128xf32, #tpu.memory_space<vmem>>) attributes {dimension_semantics = [], scalar_prefetch = 0 : i64, scratch_operands = 0 : i64, tpu.core_type = #tpu.core_type<tc>} {
    %c0 = arith.constant 0 : index
    %c0_0 = arith.constant 0 : index
    %0 = vector.load %arg0[%c0, %c0_0] : memref<8x128xf32, #tpu.memory_space<vmem>>, vector<8x128xf32>
    %c1_i32 = arith.constant 1 : i32
    %1 = tpu.dynamic_rotate %0 by %c1_i32 dim 0 : vector<8x128xf32>, i32 -> vector<8x128xf32>
    %c0_1 = arith.constant 0 : index
    %c0_2 = arith.constant 0 : index
    %2 = vector.load %arg1[%c0_1, %c0_2] : memref<8x128xf32, #tpu.memory_space<vmem>>, vector<8x128xf32>
    tpu.vector_store %arg1[%c0_1, %c0_2], %1 {strides = array<i32>} : memref<8x128xf32, #tpu.memory_space<vmem>>, vector<8x128xf32>,
    return
  }
}

</mosaic_0001>

<bundles_post_ra>
// kernel: tpu_custom_call.1
= control target key start
LH: loop header
LB: loop body
LE: loop exit
PB: predicated region body
PF: predicated region fallthrough
CT: control target
= control target key end

     0   :  { %6 = vsyncpa [#allocation3], 0  ;;  %s125_s0 = inlined_call_operand.hbm [shape: f32[8,128], index: 0, kind: input, shape index: {}]   ;;  %s126_s1 = inlined_call_operand.hbm [shape: f32[8,128], index: 1, kind: output, shape index: {}]  }
   0x1   :  { %7 = vsyncpa [#allocation4], 0  ;;  %s89_s6 = smov [#allocation2]   ;;  %s41_s10 = scalar_lea.hbm %s125_s0, 128 }
   0x2   :  { %s14_s7 = sshll.u32 %s89_s6, 4  ;;  %p42_p0 = scmp.ne.s32.totalorder %s125_s0, %s41_s10  ;;  %s15_s7 = int_to_ptr.vmem [resolvable:$true] %s14_s7 }
   0x3   :  { %p45_p1 = scmp.lt.u32.totalorder %s41_s10, %s125_s0 }
   0x5   :  { %p47_p2 = pnand %p45_p1, %p42_p0 }
   0x7   :  { %50 = shalt.err (!%p47_p2)
}
   0x8   :  { %s51_s15 = scalar_lea.vmem %s15_s7, 128  ;;  %p56_p4 = scmp.lt.s32.totalorder %s15_s7, %s15_s7 }
   0x9   :  { %p52_p3 = scmp.ne.s32.totalorder %s15_s7, %s51_s15  ;;  %p57_p5 = scmp.lt.s32.totalorder %s51_s15, %s51_s15 }
   0xb   :  { %p58_p6 = por %p57_p5, %p56_p4 }
   0xd   :  { %p59_p7 = pnand %p58_p6, %p52_p3 }
   0xf   :  { %62 = shalt.err (!%p59_p7)
}
  0x10   :  { %17 = dma.hbm_to_vmem [thread:$0]  %s125_s0, 128, %s15_s7, [#allocation3]  }
  0x11   :  { %85 = dma.done.wait [#allocation3], 128  }
  0x12   :  { %86 = vsyncadd [#allocation3], 4294967168  ;;  %s90_s18 = smov [#allocation5]   ;;  %v21_v0 = vld [vmem:[#allocation2] sm:$0xff] }
  0x13   :  { %s30_s19 = sshll.u32 %s90_s18, 4  ;;  %v22_v1 = vrot.slane %v21_v0, 7  ;;  %s31_s19 = int_to_ptr.vmem [resolvable:$true] %s30_s19 }
  0x14   :  { %s63_s20 = scalar_lea.vmem %s31_s19, 128  ;;  %p68_p9 = scmp.lt.s32.totalorder %s31_s19, %s31_s19 }
  0x15   :  { %23 = vst [vmem:[#allocation5] sm:$0xff] %v22_v1  ;;  %p64_p8 = scmp.ne.s32.totalorder %s31_s19, %s63_s20  ;;  %p69_p10 = scmp.lt.s32.totalorder %s63_s20, %s63_s20 }
  0x17   :  { %p70_p11 = por %p69_p10, %p68_p9 }
  0x19   :  { %p71_p12 = pnand %p70_p11, %p64_p8 }
  0x1b   :  { %74 = shalt.err (!%p71_p12)
}
  0x1c   :  { %s75_s23 = scalar_lea.hbm %s126_s1, 128 }
  0x1d   :  { %p76_p13 = scmp.ne.s32.totalorder %s126_s1, %s75_s23  ;;  %p79_p0 = scmp.lt.u32.totalorder %s75_s23, %s126_s1 }
  0x1f   :  { %p81_p1 = pnand %p79_p0, %p76_p13 }
  0x21   :  { %84 = shalt.err (!%p81_p1)
}
  0x22   :  { %33 = dma.vmem_to_hbm [thread:$0]  %s31_s19, 128, %s126_s1, [#allocation4]  }
  0x23   :  { %87 = dma.done.wait [#allocation4], 128  }
  0x24   :  { %88 = vsyncadd [#allocation4], 4294967168 }
  0x25   :  { %37 = vsyncpa [#allocation3], 1 }
  0x26   :  { %38 = vsyncpa [#allocation4], 1 }

</bundles_post_ra>
